<compile_context>
chip_gen: v5e
topology: v5e:2x2
jax: 0.10.0
libtpu: 0.0.40
codegen_flags: <defaults>
</compile_context>

<pallas_src>
import jax
import jax.numpy as jnp
from jax.experimental import pallas as pl
from jax.experimental.pallas import tpu as pltpu

LANE = 128
SUB_BF16 = 16  # sublane tile for packed bf16


def _round_up(x, m):
    return (x + m - 1) // m * m


def _vmem_capacity_bytes():
    try:
        return int(pltpu.get_tpu_info().vmem_capacity_bytes)
    except Exception:
        return 64 * 1024 * 1024  # conservative (v7x per-TC)


def _mlp_kernel(x_ref, w1_ref, b1_ref, w2_ref, b2_ref, w3_ref, b3_ref, o_ref):
    # x is pre-cast to bf16 in the wrapper (only streamed input -> half HBM).
    x = x_ref[...]                                             # (TB, D_in_p) bf16

    # lin1: bf16 MXU, f32 accumulation, bf16 bias+ReLU epilogue.
    h1 = jnp.dot(x, w1_ref[...], preferred_element_type=jnp.float32)
    h1 = jnp.maximum(h1.astype(jnp.bfloat16) + b1_ref[...], 0.0)   # (TB, H_p) bf16

    # lin2: same pattern; bf16 h1 feeds the MXU directly.
    h2 = jnp.dot(h1, w2_ref[...], preferred_element_type=jnp.float32)
    h2 = jnp.maximum(h2.astype(jnp.bfloat16) + b2_ref[...], 0.0)   # (TB, H_p) bf16

    # lin3 (no activation): f32 bias-add, single rounding at the bf16 store.
    out = jnp.dot(h2, w3_ref[...], preferred_element_type=jnp.float32)
    o_ref[...] = (out + b3_ref[...]).astype(o_ref.dtype)           # (TB, OUT_p) bf16


def init_mlp_params(key, input_dim, hidden_dim):
    """Deterministic init mimicking PyTorch nn.Linear default
    (uniform in +/- 1/sqrt(fan_in)).  Weights stored as (in, out), f32."""
    ks = jax.random.split(key, 6)

    def linear(kw, kb, fan_in, fan_out):
        bound = 1.0 / jnp.sqrt(jnp.float32(fan_in))
        w = jax.random.uniform(kw, (fan_in, fan_out), jnp.float32, -bound, bound)
        b = jax.random.uniform(kb, (1, fan_out), jnp.float32, -bound, bound)
        return w, b

    w1, b1 = linear(ks[0], ks[1], input_dim, hidden_dim)
    w2, b2 = linear(ks[2], ks[3], hidden_dim, hidden_dim)
    w3, b3 = linear(ks[4], ks[5], hidden_dim, 2)
    return {"w1": w1, "b1": b1, "w2": w2, "b2": b2, "w3": w3, "b3": b3}


def pad_params(params):
    """Zero-pad weights/biases to 128-aligned shapes.  Weights -> bf16 (MXU
    inputs); hidden biases -> bf16 (bf16 epilogue); final bias -> f32.
    Padded rows/cols are zero, so the math is unchanged and nothing leaks
    through ReLU.  Call once, reuse per forward."""
    w1, b1 = params["w1"], params["b1"]
    w2, b2 = params["w2"], params["b2"]
    w3, b3 = params["w3"], params["b3"]
    d_in, h = w1.shape
    out_dim = w3.shape[1]
    d_in_p = _round_up(d_in, LANE)
    h_p = _round_up(h, LANE)
    out_p = _round_up(out_dim, LANE)

    def padw(w, rows, cols):
        return jnp.pad(w, ((0, rows - w.shape[0]),
                           (0, cols - w.shape[1]))).astype(jnp.bfloat16)

    def padb(b, cols, dtype):
        b = b.reshape(1, -1)
        return jnp.pad(b, ((0, 0), (0, cols - b.shape[1]))).astype(dtype)

    return {
        "w1": padw(w1, d_in_p, h_p), "b1": padb(b1, h_p, jnp.bfloat16),
        "w2": padw(w2, h_p, h_p),    "b2": padb(b2, h_p, jnp.bfloat16),
        "w3": padw(w3, h_p, out_p),  "b3": padb(b3, out_p, jnp.float32),
        "in_dim": d_in, "out_dim": out_dim,
    }


def mlp_forward(x, pparams):
    """x: any-shaped array with leading batch dim (flattened to (B, -1) like
    the PyTorch forward).  pparams: output of pad_params()."""
    B = x.shape[0]
    w1, b1 = pparams["w1"], pparams["b1"]
    w2, b2 = pparams["w2"], pparams["b2"]
    w3, b3 = pparams["w3"], pparams["b3"]
    d_in_p, h_p = w1.shape
    out_p = w3.shape[1]
    out_dim = pparams["out_dim"]

    # Flatten like `input.view(B, -1)` and pre-cast to bf16 (MXU input dtype);
    # this is the only streamed array, so it halves the per-step HBM read.
    x2d = jnp.reshape(x, (B, -1))
    d_in = x2d.shape[1]
    assert d_in == pparams["in_dim"], (d_in, pparams["in_dim"])
    x2d = x2d.astype(jnp.bfloat16)

    # ---- batch tile selection -------------------------------------------
    # Big tiles amortize the ~0.35us/step overhead; cap at 512 rows.
    tb = _round_up(min(max(B, 1), 512), SUB_BF16)
    # Prefer >=2 grid steps when the batch allows it so both TensorCores get
    # work under megacore sharding (v7x).
    if B > 2 * SUB_BF16 and _round_up(B, tb) // tb < 2:
        tb = _round_up(-(-B // 2), SUB_BF16)

    w_bytes = (w1.size + w2.size + w3.size) * 2
    bias_bytes = (b1.size + b2.size) * 2 + b3.size * 4

    def tile_bytes(t):
        return (2 * t * d_in_p * 2          # x tiles (bf16, double buffered)
                + 2 * t * out_p * 2         # out tiles (bf16, double buffered)
                + 2 * (w_bytes + bias_bytes)  # weights/biases (worst case 2x)
                + 3 * t * h_p * 4)          # f32/bf16 intermediates

    capacity = _vmem_capacity_bytes()
    vmem_ceiling = max(32 * 1024 * 1024, capacity - 16 * 1024 * 1024)
    while tb > SUB_BF16 and 2 * tile_bytes(tb) > vmem_ceiling:
        tb = max(SUB_BF16, _round_up(tb // 2, SUB_BF16))

    b_pad = _round_up(B, tb)
    x2d = jnp.pad(x2d, ((0, b_pad - B), (0, d_in_p - d_in)))
    grid = (b_pad // tb,)

    vmem_limit = int(min(max(2 * tile_bytes(tb), 32 * 1024 * 1024), vmem_ceiling))

    # Advisory cost estimate for the XLA scheduler.
    flops = 2 * b_pad * (d_in_p * h_p + h_p * h_p + h_p * out_p)
    bytes_accessed = (x2d.size * 2 + w_bytes + bias_bytes + b_pad * out_p * 2)
    cost = pl.CostEstimate(flops=flops, transcendentals=0,
                           bytes_accessed=bytes_accessed)

    def run(single_buffer_weights):
        if single_buffer_weights:
            # Invariant blocks (constant index_map) don't need double-buffering:
            # halves resident-weight VMEM.
            def wspec(shape):
                return pl.BlockSpec(shape, lambda i: (0, 0),
                                    pipeline_mode=pl.Buffered(1))
        else:
            def wspec(shape):
                return pl.BlockSpec(shape, lambda i: (0, 0))

        out = pl.pallas_call(
            _mlp_kernel,
            out_shape=jax.ShapeDtypeStruct((b_pad, out_p), jnp.bfloat16),
            grid=grid,
            in_specs=[
                pl.BlockSpec((tb, d_in_p), lambda i: (i, 0)),  # x: streamed tiles
                wspec((d_in_p, h_p)),                          # w1: VMEM-resident
                wspec((1, h_p)),                               # b1
                wspec((h_p, h_p)),                             # w2
                wspec((1, h_p)),                               # b2
                wspec((h_p, out_p)),                           # w3
                wspec((1, out_p)),                             # b3
            ],
            out_specs=pl.BlockSpec((tb, out_p), lambda i: (i, 0)),
            compiler_params=pltpu.CompilerParams(
                dimension_semantics=("parallel",),
                vmem_limit_bytes=vmem_limit,
            ),
            cost_estimate=cost,
        )(x2d, w1, b1, w2, b2, w3, b3)
        return jax.block_until_ready(out)

    try:
        out = run(True)
    except Exception:
        # Older/newer jax without pipeline_mode=Buffered(1) support: fall back
        # to default (double-buffered) pipelining for the invariant blocks.
        out = run(False)

    # Strip batch and lane padding; return f32 like the PyTorch forward.
    return out[:B, :out_dim].astype(jnp.float32)


def mlp_reference(x, params):
    """Pure-JAX f32 reference of the same forward pass (correctness check)."""
    B = x.shape[0]
    h = jnp.reshape(x, (B, -1)).astype(jnp.float32)
    h = jnp.maximum(h @ params["w1"] + params["b1"], 0.0)
    h = jnp.maximum(h @ params["w2"] + params["b2"], 0.0)
    return h @ params["w3"] + params["b3"]


if __name__ == "__main__":
    key = jax.random.PRNGKey(0)
    k_x, k_p = jax.random.split(key)

    # Small synthetic input: batch=2, features (4, 16) -> input_dim = 64
    batch, c, f = 2, 4, 16
    input_dim = c * f
    hidden_dim = 32

    x = jax.random.normal(k_x, (batch, c, f), dtype=jnp.float32)
    params = init_mlp_params(k_p, input_dim, hidden_dim)
    pparams = pad_params(params)

    out = mlp_forward(x, pparams)
    out = jax.block_until_ready(out)

    ref = mlp_reference(x, params)
    assert out.shape == (batch, 2), out.shape
    # bf16 MXU inputs + bf16 epilogues with f32 accumulation -> loosened
    # tolerance vs the pure-f32 reference.
    assert jnp.allclose(out, ref, atol=5e-2, rtol=5e-2), "mismatch vs reference"

    print("KERNEL_OK")
</pallas_src>

<mosaic_0001>
module attributes {stable_mosaic.version = 11 : i64} {
  func.func @_mlp_kernel(%arg0: i32, %arg1: memref<16x128xbf16, #tpu.memory_space<vmem>>, %arg2: memref<128x128xbf16, #tpu.memory_space<vmem>>, %arg3: memref<1x128xbf16, #tpu.memory_space<vmem>>, %arg4: memref<128x128xbf16, #tpu.memory_space<vmem>>, %arg5: memref<1x128xbf16, #tpu.memory_space<vmem>>, %arg6: memref<128x128xbf16, #tpu.memory_space<vmem>>, %arg7: memref<1x128xf32, #tpu.memory_space<vmem>>, %arg8: memref<16x128xbf16, #tpu.memory_space<vmem>>) attributes {dimension_semantics = [#tpu.dimension_semantics<parallel>], iteration_bounds = array<i64: 1>, scalar_prefetch = 0 : i64, scratch_operands = 0 : i64, tpu.core_type = #tpu.core_type<tc>, window_params = [{transform_indices = @transform_0, window_bounds = array<i64: 16, 128>}, {pipeline_mode = #tpu.pipeline_mode<synchronous>, transform_indices = @transform_1, window_bounds = array<i64: 128, 128>}, {pipeline_mode = #tpu.pipeline_mode<synchronous>, transform_indices = @transform_2, window_bounds = array<i64: 1, 128>}, {pipeline_mode = #tpu.pipeline_mode<synchronous>, transform_indices = @transform_3, window_bounds = array<i64: 128, 128>}, {pipeline_mode = #tpu.pipeline_mode<synchronous>, transform_indices = @transform_4, window_bounds = array<i64: 1, 128>}, {pipeline_mode = #tpu.pipeline_mode<synchronous>, transform_indices = @transform_5, window_bounds = array<i64: 128, 128>}, {pipeline_mode = #tpu.pipeline_mode<synchronous>, transform_indices = @transform_6, window_bounds = array<i64: 1, 128>}, {transform_indices = @transform_7, window_bounds = array<i64: 16, 128>}]} {
    %c0 = arith.constant 0 : index
    %c0_0 = arith.constant 0 : index
    %0 = vector.load %arg1[%c0, %c0_0] : memref<16x128xbf16, #tpu.memory_space<vmem>>, vector<16x128xbf16>
    %c0_1 = arith.constant 0 : index
    %c0_2 = arith.constant 0 : index
    %1 = vector.load %arg2[%c0_1, %c0_2] : memref<128x128xbf16, #tpu.memory_space<vmem>>, vector<128x128xbf16>
    %cst = arith.constant dense<0.000000e+00> : vector<16x128xf32>
    %2 = tpu.matmul %0, %1, %cst {dimension_numbers = #tpu.dot_dimension_numbers<[1], [0], [0], [1], [0, 0, 1, 1], [], []>} : vector<16x128xbf16>, vector<128x128xbf16>, vector<16x128xf32> -> vector<16x128xf32>
    %3 = arith.truncf %2 : vector<16x128xf32> to vector<16x128xbf16>
    %c0_3 = arith.constant 0 : index
    %c0_4 = arith.constant 0 : index
    %4 = vector.load %arg3[%c0_3, %c0_4] : memref<1x128xbf16, #tpu.memory_space<vmem>>, vector<1x128xbf16>
    %5 = vector.broadcast %4 : vector<1x128xbf16> to vector<16x128xbf16>
    %6 = arith.addf %3, %5 : vector<16x128xbf16>
    %cst_5 = arith.constant 0.000000e+00 : bf16
    %7 = vector.broadcast %cst_5 : bf16 to vector<16x128xbf16>
    %8 = arith.maximumf %6, %7 : vector<16x128xbf16>
    %c0_6 = arith.constant 0 : index
    %c0_7 = arith.constant 0 : index
    %9 = vector.load %arg4[%c0_6, %c0_7] : memref<128x128xbf16, #tpu.memory_space<vmem>>, vector<128x128xbf16>
    %cst_8 = arith.constant dense<0.000000e+00> : vector<16x128xf32>
    %10 = tpu.matmul %8, %9, %cst_8 {dimension_numbers = #tpu.dot_dimension_numbers<[1], [0], [0], [1], [0, 0, 1, 1], [], []>} : vector<16x128xbf16>, vector<128x128xbf16>, vector<16x128xf32> -> vector<16x128xf32>
    %11 = arith.truncf %10 : vector<16x128xf32> to vector<16x128xbf16>
    %c0_9 = arith.constant 0 : index
    %c0_10 = arith.constant 0 : index
    %12 = vector.load %arg5[%c0_9, %c0_10] : memref<1x128xbf16, #tpu.memory_space<vmem>>, vector<1x128xbf16>
    %13 = vector.broadcast %12 : vector<1x128xbf16> to vector<16x128xbf16>
    %14 = arith.addf %11, %13 : vector<16x128xbf16>
    %cst_11 = arith.constant 0.000000e+00 : bf16
    %15 = vector.broadcast %cst_11 : bf16 to vector<16x128xbf16>
    %16 = arith.maximumf %14, %15 : vector<16x128xbf16>
    %c0_12 = arith.constant 0 : index
    %c0_13 = arith.constant 0 : index
    %17 = vector.load %arg6[%c0_12, %c0_13] : memref<128x128xbf16, #tpu.memory_space<vmem>>, vector<128x128xbf16>
    %cst_14 = arith.constant dense<0.000000e+00> : vector<16x128xf32>
    %18 = tpu.matmul %16, %17, %cst_14 {dimension_numbers = #tpu.dot_dimension_numbers<[1], [0], [0], [1], [0, 0, 1, 1], [], []>} : vector<16x128xbf16>, vector<128x128xbf16>, vector<16x128xf32> -> vector<16x128xf32>
    %c0_15 = arith.constant 0 : index
    %c0_16 = arith.constant 0 : index
    %19 = vector.load %arg7[%c0_15, %c0_16] : memref<1x128xf32, #tpu.memory_space<vmem>>, vector<1x128xf32>
    %20 = vector.broadcast %19 : vector<1x128xf32> to vector<16x128xf32>
    %21 = arith.addf %18, %20 : vector<16x128xf32>
    %22 = arith.truncf %21 : vector<16x128xf32> to vector<16x128xbf16>
    %c0_17 = arith.constant 0 : index
    %c0_18 = arith.constant 0 : index
    %23 = vector.load %arg8[%c0_17, %c0_18] : memref<16x128xbf16, #tpu.memory_space<vmem>>, vector<16x128xbf16>
    tpu.vector_store %arg8[%c0_17, %c0_18], %22 {strides = array<i32>} : memref<16x128xbf16, #tpu.memory_space<vmem>>, vector<16x128xbf16>,
    return
  }
  func.func @transform_0(%arg0: i32) -> (i32, i32) {
    %c0_i32 = arith.constant 0 : i32
    %c0_i32_0 = arith.constant 0 : i32
    return %arg0, %c0_i32 : i32, i32
  }
  func.func @transform_1(%arg0: i32) -> (i32, i32) {
    %c0_i32 = arith.constant 0 : i32
    %c0_i32_0 = arith.constant 0 : i32
    %c0_i32_1 = arith.constant 0 : i32
    return %c0_i32, %c0_i32_0 : i32, i32
  }
  func.func @transform_2(%arg0: i32) -> (i32, i32) {
    %c0_i32 = arith.constant 0 : i32
    %c0_i32_0 = arith.constant 0 : i32
    %c0_i32_1 = arith.constant 0 : i32
    return %c0_i32, %c0_i32_0 : i32, i32
  }
  func.func @transform_3(%arg0: i32) -> (i32, i32) {
    %c0_i32 = arith.constant 0 : i32
    %c0_i32_0 = arith.constant 0 : i32
    %c0_i32_1 = arith.constant 0 : i32
    return %c0_i32, %c0_i32_0 : i32, i32
  }
  func.func @transform_4(%arg0: i32) -> (i32, i32) {
    %c0_i32 = arith.constant 0 : i32
    %c0_i32_0 = arith.constant 0 : i32
    %c0_i32_1 = arith.constant 0 : i32
    return %c0_i32, %c0_i32_0 : i32, i32
  }
  func.func @transform_5(%arg0: i32) -> (i32, i32) {
    %c0_i32 = arith.constant 0 : i32
    %c0_i32_0 = arith.constant 0 : i32
    %c0_i32_1 = arith.constant 0 : i32
    return %c0_i32, %c0_i32_0 : i32, i32
  }
  func.func @transform_6(%arg0: i32) -> (i32, i32) {
    %c0_i32 = arith.constant 0 : i32
    %c0_i32_0 = arith.constant 0 : i32
    %c0_i32_1 = arith.constant 0 : i32
    return %c0_i32, %c0_i32_0 : i32, i32
  }
  func.func @transform_7(%arg0: i32) -> (i32, i32) {
    %c0_i32 = arith.constant 0 : i32
    %c0_i32_0 = arith.constant 0 : i32
    return %arg0, %c0_i32 : i32, i32
  }
}

module attributes {stable_mosaic.version = 11 : i64} {
  func.func @_mlp_kernel(%arg0: i32, %arg1: memref<16x128xbf16, #tpu.memory_space<vmem>>, %arg2: memref<128x128xbf16, #tpu.memory_space<vmem>>, %arg3: memref<1x128xbf16, #tpu.memory_space<vmem>>, %arg4: memref<128x128xbf16, #tpu.memory_space<vmem>>, %arg5: memref<1x128xbf16, #tpu.memory_space<vmem>>, %arg6: memref<128x128xbf16, #tpu.memory_space<vmem>>, %arg7: memref<1x128xf32, #tpu.memory_space<vmem>>, %arg8: memref<16x128xbf16, #tpu.memory_space<vmem>>) attributes {dimension_semantics = [#tpu.dimension_semantics<parallel>], iteration_bounds = array<i64: 1>, scalar_prefetch = 0 : i64, scratch_operands = 0 : i64, tpu.core_type = #tpu.core_type<tc>, window_params = [{transform_indices = @transform_0, window_bounds = array<i64: 16, 128>}, {pipeline_mode = #tpu.pipeline_mode<synchronous>, transform_indices = @transform_1, window_bounds = array<i64: 128, 128>}, {pipeline_mode = #tpu.pipeline_mode<synchronous>, transform_indices = @transform_2, window_bounds = array<i64: 1, 128>}, {pipeline_mode = #tpu.pipeline_mode<synchronous>, transform_indices = @transform_3, window_bounds = array<i64: 128, 128>}, {pipeline_mode = #tpu.pipeline_mode<synchronous>, transform_indices = @transform_4, window_bounds = array<i64: 1, 128>}, {pipeline_mode = #tpu.pipeline_mode<synchronous>, transform_indices = @transform_5, window_bounds = array<i64: 128, 128>}, {pipeline_mode = #tpu.pipeline_mode<synchronous>, transform_indices = @transform_6, window_bounds = array<i64: 1, 128>}, {transform_indices = @transform_7, window_bounds = array<i64: 16, 128>}]} {
    %c0 = arith.constant 0 : index
    %c0_0 = arith.constant 0 : index
    %0 = vector.load %arg1[%c0, %c0_0] : memref<16x128xbf16, #tpu.memory_space<vmem>>, vector<16x128xbf16>
    %c0_1 = arith.constant 0 : index
    %c0_2 = arith.constant 0 : index
    %1 = vector.load %arg2[%c0_1, %c0_2] : memref<128x128xbf16, #tpu.memory_space<vmem>>, vector<128x128xbf16>
    %cst = arith.constant dense<0.000000e+00> : vector<16x128xf32>
    %2 = tpu.matmul %0, %1, %cst {dimension_numbers = #tpu.dot_dimension_numbers<[1], [0], [0], [1], [0, 0, 1, 1], [], []>} : vector<16x128xbf16>, vector<128x128xbf16>, vector<16x128xf32> -> vector<16x128xf32>
    %3 = arith.truncf %2 : vector<16x128xf32> to vector<16x128xbf16>
    %c0_3 = arith.constant 0 : index
    %c0_4 = arith.constant 0 : index
    %4 = vector.load %arg3[%c0_3, %c0_4] : memref<1x128xbf16, #tpu.memory_space<vmem>>, vector<1x128xbf16>
    %5 = vector.broadcast %4 : vector<1x128xbf16> to vector<16x128xbf16>
    %6 = arith.addf %3, %5 : vector<16x128xbf16>
    %cst_5 = arith.constant 0.000000e+00 : bf16
    %7 = vector.broadcast %cst_5 : bf16 to vector<16x128xbf16>
    %8 = arith.maximumf %6, %7 : vector<16x128xbf16>
    %c0_6 = arith.constant 0 : index
    %c0_7 = arith.constant 0 : index
    %9 = vector.load %arg4[%c0_6, %c0_7] : memref<128x128xbf16, #tpu.memory_space<vmem>>, vector<128x128xbf16>
    %cst_8 = arith.constant dense<0.000000e+00> : vector<16x128xf32>
    %10 = tpu.matmul %8, %9, %cst_8 {dimension_numbers = #tpu.dot_dimension_numbers<[1], [0], [0], [1], [0, 0, 1, 1], [], []>} : vector<16x128xbf16>, vector<128x128xbf16>, vector<16x128xf32> -> vector<16x128xf32>
    %11 = arith.truncf %10 : vector<16x128xf32> to vector<16x128xbf16>
    %c0_9 = arith.constant 0 : index
    %c0_10 = arith.constant 0 : index
    %12 = vector.load %arg5[%c0_9, %c0_10] : memref<1x128xbf16, #tpu.memory_space<vmem>>, vector<1x128xbf16>
    %13 = vector.broadcast %12 : vector<1x128xbf16> to vector<16x128xbf16>
    %14 = arith.addf %11, %13 : vector<16x128xbf16>
    %cst_11 = arith.constant 0.000000e+00 : bf16
    %15 = vector.broadcast %cst_11 : bf16 to vector<16x128xbf16>
    %16 = arith.maximumf %14, %15 : vector<16x128xbf16>
    %c0_12 = arith.constant 0 : index
    %c0_13 = arith.constant 0 : index
    %17 = vector.load %arg6[%c0_12, %c0_13] : memref<128x128xbf16, #tpu.memory_space<vmem>>, vector<128x128xbf16>
    %cst_14 = arith.constant dense<0.000000e+00> : vector<16x128xf32>
    %18 = tpu.matmul %16, %17, %cst_14 {dimension_numbers = #tpu.dot_dimension_numbers<[1], [0], [0], [1], [0, 0, 1, 1], [], []>} : vector<16x128xbf16>, vector<128x128xbf16>, vector<16x128xf32> -> vector<16x128xf32>
    %c0_15 = arith.constant 0 : index
    %c0_16 = arith.constant 0 : index
    %19 = vector.load %arg7[%c0_15, %c0_16] : memref<1x128xf32, #tpu.memory_space<vmem>>, vector<1x128xf32>
    %20 = vector.broadcast %19 : vector<1x128xf32> to vector<16x128xf32>
    %21 = arith.addf %18, %20 : vector<16x128xf32>
    %22 = arith.truncf %21 : vector<16x128xf32> to vector<16x128xbf16>
    %c0_17 = arith.constant 0 : index
    %c0_18 = arith.constant 0 : index
    %23 = vector.load %arg8[%c0_17, %c0_18] : memref<16x128xbf16, #tpu.memory_space<vmem>>, vector<16x128xbf16>
    tpu.vector_store %arg8[%c0_17, %c0_18], %22 {strides = array<i32>} : memref<16x128xbf16, #tpu.memory_space<vmem>>, vector<16x128xbf16>,
    return
  }
  func.func @transform_0(%arg0: i32) -> (i32, i32) {
    %c0_i32 = arith.constant 0 : i32
    %c0_i32_0 = arith.constant 0 : i32
    return %arg0, %c0_i32 : i32, i32
  }
  func.func @transform_1(%arg0: i32) -> (i32, i32) {
    %c0_i32 = arith.constant 0 : i32
    %c0_i32_0 = arith.constant 0 : i32
    %c0_i32_1 = arith.constant 0 : i32
    return %c0_i32, %c0_i32_0 : i32, i32
  }
  func.func @transform_2(%arg0: i32) -> (i32, i32) {
    %c0_i32 = arith.constant 0 : i32
    %c0_i32_0 = arith.constant 0 : i32
    %c0_i32_1 = arith.constant 0 : i32
    return %c0_i32, %c0_i32_0 : i32, i32
  }
  func.func @transform_3(%arg0: i32) -> (i32, i32) {
    %c0_i32 = arith.constant 0 : i32
    %c0_i32_0 = arith.constant 0 : i32
    %c0_i32_1 = arith.constant 0 : i32
    return %c0_i32, %c0_i32_0 : i32, i32
  }
  func.func @transform_4(%arg0: i32) -> (i32, i32) {
    %c0_i32 = arith.constant 0 : i32
    %c0_i32_0 = arith.constant 0 : i32
    %c0_i32_1 = arith.constant 0 : i32
    return %c0_i32, %c0_i32_0 : i32, i32
  }
  func.func @transform_5(%arg0: i32) -> (i32, i32) {
    %c0_i32 = arith.constant 0 : i32
    %c0_i32_0 = arith.constant 0 : i32
    %c0_i32_1 = arith.constant 0 : i32
    return %c0_i32, %c0_i32_0 : i32, i32
  }
  func.func @transform_6(%arg0: i32) -> (i32, i32) {
    %c0_i32 = arith.constant 0 : i32
    %c0_i32_0 = arith.constant 0 : i32
    %c0_i32_1 = arith.constant 0 : i32
    return %c0_i32, %c0_i32_0 : i32, i32
  }
  func.func @transform_7(%arg0: i32) -> (i32, i32) {
    %c0_i32 = arith.constant 0 : i32
    %c0_i32_0 = arith.constant 0 : i32
    return %arg0, %c0_i32 : i32, i32
  }
}

</mosaic_0001>

<bundles_post_ra>
// kernel: tpu_custom_call.1
= control target key start
LH: loop header
LB: loop body
LE: loop exit
PB: predicated region body
PF: predicated region fallthrough
CT: control target
= control target key end

     0   :  { %12 = vsyncpa [#allocation3], 0  ;;  %s751_s0 = inlined_call_operand.hbm [shape: bf16[16,128], index: 0, kind: input, shape index: {}]   ;;  %s752_s1 = inlined_call_operand.hbm [shape: bf16[128,128], index: 1, kind: input, shape index: {}]   ;;  %s753_s2 = inlined_call_operand.vmem [shape: bf16[1,128], index: 2, kind: input, shape index: {}]   ;;  %s754_s3 = inlined_call_operand.hbm [shape: bf16[128,128], index: 3, kind: input, shape index: {}]   ;;  %s755_s4 = inlined_call_operand.vmem [shape: bf16[1,128], index: 4, kind: input, shape index: {}]   ;;  %s756_s5 = inlined_call_operand.hbm [shape: bf16[128,128], index: 5, kind: input, shape index: {}]   ;;  %s757_s6 = inlined_call_operand.vmem [shape: f32[1,128], index: 6, kind: input, shape index: {}]   ;;  %s758_s7 = inlined_call_operand.hbm [shape: bf16[16,128], index: 7, kind: output, shape index: {}]  }
   0x1   :  { %13 = vsyncpa [#allocation6], 0 }
   0x2   :  { %14 = vsyncpa [#allocation9], 0 }
   0x3   :  { %15 = vsyncpa [#allocation4], 0  ;;  %s33_s26 = sshll.u32 %s752_s1, 4  ;;  %s665_s27 = smov [#allocation5]   ;;  %s34_s26 = int_to_ptr.hbm [resolvable:$true] %s33_s26 }
   0x4   :  { %s35_s28 = sshll.u32 %s665_s27, 4  ;;  %s20_s8 = sshll.u32 %s751_s0, 4  ;;  %s36_s28 = int_to_ptr.vmem [resolvable:$true] %s35_s28  ;;  %s21_s8 = int_to_ptr.hbm [resolvable:$true] %s20_s8 }
   0x5   :  { %s666_s9 = smov 64   ;;  %s667_s10 = smov 4  }
   0x6   :  { %41 = dma.hbm_to_vmem [thread:$0]  %s34_s26, 1024, %s36_s28, [#allocation6], %s666_s9, %s666_s9, %s667_s10  }
   0x7   :  { %s668_s11 = smov [#allocation2]   ;;  %s48_s1 = sshll.u32 %s754_s3, 4  ;;  %s49_s1 = int_to_ptr.hbm [resolvable:$true] %s48_s1 }
   0x8   :  { %s22_s12 = sshll.u32 %s668_s11, 4  ;;  %s63_s16 = sshll.u32 %s756_s5, 4  ;;  %s23_s12 = int_to_ptr.vmem [resolvable:$true] %s22_s12  ;;  %s64_s16 = int_to_ptr.hbm [resolvable:$true] %s63_s16 }
   0x9   :  { %28 = dma.hbm_to_vmem [thread:$0]  %s21_s8, 128, %s23_s12, [#allocation3], %s666_s9, %s666_s9, %s667_s10  }
   0xa   :  { %s669_s17 = smov [#allocation7]   ;;  %s670_s19 = smov [#allocation8]  }
   0xb   :  { %s50_s18 = sshll.u32 %s669_s17, 4  ;;  %s65_s3 = sshll.u32 %s670_s19, 4  ;;  %s51_s18 = int_to_ptr.vmem [resolvable:$true] %s50_s18  ;;  %s66_s3 = int_to_ptr.vmem [resolvable:$true] %s65_s3 }
   0xc   :  { %56 = dma.hbm_to_vmem [thread:$0]  %s49_s1, 1024, %s51_s18, [#allocation6], %s666_s9, %s666_s9, %s667_s10  }
   0xd   :  { %71 = dma.hbm_to_vmem [thread:$0]  %s64_s16, 1024, %s66_s3, [#allocation9], %s666_s9, %s666_s9, %s667_s10  }
   0xe   :  { %657 = dma.done.wait [#allocation3], 128  }
   0xf   :  { %658 = vsyncadd [#allocation3], 4294967168 }
  0x10   :  { %659 = dma.done.wait [#allocation6], 2048  }
  0x11   :  { %660 = vsyncadd [#allocation6], 4294965248 }
  0x12   :  { %661 = dma.done.wait [#allocation9], 1024  }
  0x13   :  { %662 = vsyncadd [#allocation9], 4294966272  ;;  %v507_v0 = vld [vmem:[#allocation5 + $0x38] sm:$0xff]  ;;  %v506_v1 = vld [vmem:[#allocation5 + $0x30] sm:$0xff]  ;;  %s384_s27 = sshll.u32 %s758_s7, 4  ;;  %s385_s27 = int_to_ptr.hbm [resolvable:$true] %s384_s27 }
  0x14   :  { %162 = vmatpush.bf16.msra.mxu0 %v507_v0  ;;  %v515_v2 = vld [vmem:[#allocation7 + $0x38] sm:$0xff]  ;;  %v514_v3 = vld [vmem:[#allocation7 + $0x30] sm:$0xff]  ;;  %v505_v4 = vld [vmem:[#allocation5 + $0x28] sm:$0xff] }
  0x15   :  { %259 = vmatpush.bf16.msra.mxu1 %v515_v2  ;;  %v513_v5 = vld [vmem:[#allocation7 + $0x28] sm:$0xff]  ;;  %v504_v6 = vld [vmem:[#allocation5 + $0x20] sm:$0xff]  ;;  %v503_v7 = vld [vmem:[#allocation5 + $0x18] sm:$0xff] }
  0x16   :  { %v502_v8 = vld [vmem:[#allocation5 + $0x10] sm:$0xff]  ;;  %v501_v9 = vld [vmem:[#allocation5 + $0x8] sm:$0xff]  ;;  %v500_v10 = vld [vmem:[#allocation5] sm:$0xff] }
  0x17   :  { %v499_v11 = vld [vmem:[#allocation2] sm:$0xff]  ;;  %v512_v12 = vld [vmem:[#allocation7 + $0x20] sm:$0xff]  ;;  %v510_v14 = vld [vmem:[#allocation7 + $0x10] sm:$0xff] }
  0x18   :  { %163 = vmatpush.bf16.msra.mxu0 %v506_v1  ;;  %v511_v13 = vld [vmem:[#allocation7 + $0x18] sm:$0xff]  ;;  %v509_v15 = vld [vmem:[#allocation7 + $0x8] sm:$0xff]  ;;  %v508_v16 = vld [vmem:[#allocation7] sm:$0xff] }
  0x19   :  { %260 = vmatpush.bf16.msra.mxu1 %v514_v3  ;;  %v523_v17 = vld [vmem:[#allocation8 + $0x38] sm:$0xff]  ;;  %v522_v18 = vld [vmem:[#allocation8 + $0x30] sm:$0xff]  ;;  %v521_v19 = vld [vmem:[#allocation8 + $0x28] sm:$0xff] }
  0x1a   :  { %360 = vmatpush.bf16.msra.mxu2 %v523_v17  ;;  %v178_v20 = vld [vmem:[%s753_s2] sm:$0x1]  ;;  %v520_v35 = vld [vmem:[#allocation8 + $0x20] sm:$0xff]  ;;  %v518_v37 = vld [vmem:[#allocation8 + $0x10] sm:$0xff] }
  0x1b   :  { %v180_v21 = vpack.i.b16 %v178_v20, %v178_v20  ;;  %v519_v36 = vld [vmem:[#allocation8 + $0x18] sm:$0xff]  ;;  %v517_v38 = vld [vmem:[#allocation8 + $0x8] sm:$0xff]  ;;  %v516_v39 = vld [vmem:[#allocation8] sm:$0xff] }
  0x1c   :  { %164 = vmatpush.bf16.msra.mxu0 %v505_v4  ;;  %v275_v40 = vld [vmem:[%s755_s4] sm:$0x1]  ;;  %s671_s4 = smov [#allocation10]  }
  0x1d   :  { %261 = vmatpush.bf16.msra.mxu1 %v513_v5  ;;  %v182_v24 = vperm.slane %v180_v21, 0  ;;  %v277_v41 = vpack.i.b16 %v275_v40, %v275_v40  ;;  %v536_v56 = vld [vmem:[%s757_s6] ss:$0 sm:$0xff]  ;;  %s382_s24 = sshll.u32 %s671_s4, 4  ;;  %s383_s24 = int_to_ptr.vmem [resolvable:$true] %s382_s24 }
  0x1e   :  { %361 = vmatpush.bf16.msra.mxu2 %v522_v18 }
  0x1f   :  { %v185_v26 = vunpack.c.l.bf16 %v182_v24  ;;  %v279_v44 = vperm.slane %v277_v41, 0 }
  0x20   :  { %165 = vmatpush.bf16.msra.mxu0 %v504_v6 }
  0x21   :  { %262 = vmatpush.bf16.msra.mxu1 %v512_v12  ;;  %v282_v46 = vunpack.c.l.bf16 %v279_v44 }
  0x22   :  { %362 = vmatpush.bf16.msra.mxu2 %v521_v19 }
  0x24   :  { %166 = vmatpush.bf16.msra.mxu0 %v503_v7 }
  0x25   :  { %263 = vmatpush.bf16.msra.mxu1 %v511_v13 }
  0x26   :  { %363 = vmatpush.bf16.msra.mxu2 %v520_v35 }
  0x28   :  { %167 = vmatpush.bf16.msra.mxu0 %v502_v8 }
  0x29   :  { %264 = vmatpush.bf16.msra.mxu1 %v510_v14 }
  0x2a   :  { %364 = vmatpush.bf16.msra.mxu2 %v519_v36 }
  0x2c   :  { %168 = vmatpush.bf16.msra.mxu0 %v501_v9 }
  0x2d   :  { %265 = vmatpush.bf16.msra.mxu1 %v509_v15 }
  0x2e   :  { %365 = vmatpush.bf16.msra.mxu2 %v518_v37 }
  0x30   :  { %169 = vmatpush.bf16.msra.mxu0 %v500_v10 }
  0x31   :  { %266 = vmatpush.bf16.msra.mxu1 %v508_v16 }
  0x32   :  { %366 = vmatpush.bf16.msra.mxu2 %v517_v38 }
  0x33   :  { %170 = vmatmul.bf16.vlgmr.msra.gmra.mxu0 %v499_v11 }
  0x36   :  { %367 = vmatpush.bf16.msra.mxu2 %v516_v39 }
  0xb0   :  { %v171_v22 = vpop.f32.mrf.mxu0 }
  0xb1   :  { %v176_v23 = vpack.c.bf16 %v171_v22, %v171_v22 }
  0xb3   :  { %v183_v25 = vunpack.c.l.bf16 %v176_v23 }
  0xb5   :  { %v186_v29 = vadd.f32 %v185_v26, %v183_v25 }
  0xb7   :  { %v192_v33 = vmax.f32 %v186_v29, 0.0 }
  0xb8   :  { %v173_v27 = vpop.f32.mrf.mxu0 }
  0xb9   :  { %v177_v28 = vpack.c.bf16 %v173_v27, %v173_v27 }
  0xbb   :  { %v184_v30 = vunpack.c.l.bf16 %v177_v28 }
  0xbd   :  { %v187_v31 = vadd.f32 %v185_v26, %v184_v30 }
  0xbf   :  { %v193_v32 = vmax.f32 %v187_v31, 0.0 }
  0xc1   :  { %v194_v34 = vpack.c.bf16 %v193_v32, %v192_v33 }
  0xc3   :  { %267 = vmatmul.bf16.vlgmr.msra.gmra.mxu1 %v194_v34 }
 0x140   :  { %v268_v42 = vpop.f32.mrf.mxu1 }
 0x141   :  { %v273_v43 = vpack.c.bf16 %v268_v42, %v268_v42 }
 0x143   :  { %v280_v45 = vunpack.c.l.bf16 %v273_v43 }
 0x145   :  { %v283_v49 = vadd.f32 %v282_v46, %v280_v45 }
 0x147   :  { %v289_v53 = vmax.f32 %v283_v49, 0.0 }
 0x148   :  { %v270_v47 = vpop.f32.mrf.mxu1 }
 0x149   :  { %v274_v48 = vpack.c.bf16 %v270_v47, %v270_v47 }
 0x14b   :  { %v281_v50 = vunpack.c.l.bf16 %v274_v48 }
 0x14d   :  { %v284_v51 = vadd.f32 %v282_v46, %v281_v50 }
 0x14f   :  { %v290_v52 = vmax.f32 %v284_v51, 0.0 }
 0x151   :  { %v291_v54 = vpack.c.bf16 %v290_v52, %v289_v53 }
 0x153   :  { %368 = vmatmul.bf16.vlgmr.msra.gmra.mxu2 %v291_v54 }
 0x1d6   :  { %v369_v55 = vpop.f32.mrf.mxu2 }
 0x1d7   :  { %v370_v58 = vadd.f32 %v536_v56, %v369_v55 }
 0x1de   :  { %v371_v57 = vpop.f32.mrf.mxu2 }
 0x1df   :  { %v372_v59 = vadd.f32 %v536_v56, %v371_v57 }
 0x1e1   :  { %v527_v60 = vpack.c.bf16 %v372_v59, %v370_v58 }
 0x1e3   :  { %528 = vst [vmem:[#allocation10] sm:$0xff] %v527_v60  }
 0x1e4   :  { %390 = dma.vmem_to_hbm [thread:$0]  %s383_s24, 128, %s385_s27, [#allocation4], %s666_s9, %s666_s9, %s667_s10  }
 0x1e5   :  { %663 = dma.done.wait [#allocation4], 128  }
 0x1e6   :  { %664 = vsyncadd [#allocation4], 4294967168 }
 0x1e7   :  { %395 = vsyncpa [#allocation3], 1 }
 0x1e8   :  { %396 = vsyncpa [#allocation6], 1 }
 0x1e9   :  { %397 = vsyncpa [#allocation9], 1 }
 0x1ea   :  { %398 = vsyncpa [#allocation4], 1 }

// kernel: tpu_custom_call.1
= control target key start
LH: loop header
LB: loop body
LE: loop exit
PB: predicated region body
PF: predicated region fallthrough
CT: control target
= control target key end

     0   :  { %12 = vsyncpa [#allocation3], 0  ;;  %s751_s0 = inlined_call_operand.hbm [shape: bf16[16,128], index: 0, kind: input, shape index: {}]   ;;  %s752_s1 = inlined_call_operand.hbm [shape: bf16[128,128], index: 1, kind: input, shape index: {}]   ;;  %s753_s2 = inlined_call_operand.vmem [shape: bf16[1,128], index: 2, kind: input, shape index: {}]   ;;  %s754_s3 = inlined_call_operand.hbm [shape: bf16[128,128], index: 3, kind: input, shape index: {}]   ;;  %s755_s4 = inlined_call_operand.vmem [shape: bf16[1,128], index: 4, kind: input, shape index: {}]   ;;  %s756_s5 = inlined_call_operand.hbm [shape: bf16[128,128], index: 5, kind: input, shape index: {}]   ;;  %s757_s6 = inlined_call_operand.vmem [shape: f32[1,128], index: 6, kind: input, shape index: {}]   ;;  %s758_s7 = inlined_call_operand.hbm [shape: bf16[16,128], index: 7, kind: output, shape index: {}]  }
   0x1   :  { %13 = vsyncpa [#allocation6], 0 }
   0x2   :  { %14 = vsyncpa [#allocation9], 0 }
   0x3   :  { %15 = vsyncpa [#allocation4], 0  ;;  %s33_s26 = sshll.u32 %s752_s1, 4  ;;  %s665_s27 = smov [#allocation5]   ;;  %s34_s26 = int_to_ptr.hbm [resolvable:$true] %s33_s26 }
   0x4   :  { %s35_s28 = sshll.u32 %s665_s27, 4  ;;  %s20_s8 = sshll.u32 %s751_s0, 4  ;;  %s36_s28 = int_to_ptr.vmem [resolvable:$true] %s35_s28  ;;  %s21_s8 = int_to_ptr.hbm [resolvable:$true] %s20_s8 }
   0x5   :  { %s666_s9 = smov 64   ;;  %s667_s10 = smov 4  }
   0x6   :  { %41 = dma.hbm_to_vmem [thread:$0]  %s34_s26, 1024, %s36_s28, [#allocation6], %s666_s9, %s666_s9, %s667_s10  }
   0x7   :  { %s668_s11 = smov [#allocation2]   ;;  %s48_s1 = sshll.u32 %s754_s3, 4  ;;  %s49_s1 = int_to_ptr.hbm [resolvable:$true] %s48_s1 }
   0x8   :  { %s22_s12 = sshll.u32 %s668_s11, 4  ;;  %s63_s16 = sshll.u32 %s756_s5, 4  ;;  %s23_s12 = int_to_ptr.vmem [resolvable:$true] %s22_s12  ;;  %s64_s16 = int_to_ptr.hbm [resolvable:$true] %s63_s16 }
   0x9   :  { %28 = dma.hbm_to_vmem [thread:$0]  %s21_s8, 128, %s23_s12, [#allocation3], %s666_s9, %s666_s9, %s667_s10  }
   0xa   :  { %s669_s17 = smov [#allocation7]   ;;  %s670_s19 = smov [#allocation8]  }
   0xb   :  { %s50_s18 = sshll.u32 %s669_s17, 4  ;;  %s65_s3 = sshll.u32 %s670_s19, 4  ;;  %s51_s18 = int_to_ptr.vmem [resolvable:$true] %s50_s18  ;;  %s66_s3 = int_to_ptr.vmem [resolvable:$true] %s65_s3 }
   0xc   :  { %56 = dma.hbm_to_vmem [thread:$0]  %s49_s1, 1024, %s51_s18, [#allocation6], %s666_s9, %s666_s9, %s667_s10  }
   0xd   :  { %71 = dma.hbm_to_vmem [thread:$0]  %s64_s16, 1024, %s66_s3, [#allocation9], %s666_s9, %s666_s9, %s667_s10  }
   0xe   :  { %657 = dma.done.wait [#allocation3], 128  }
   0xf   :  { %658 = vsyncadd [#allocation3], 4294967168 }
  0x10   :  { %659 = dma.done.wait [#allocation6], 2048  }
  0x11   :  { %660 = vsyncadd [#allocation6], 4294965248 }
  0x12   :  { %661 = dma.done.wait [#allocation9], 1024  }
  0x13   :  { %662 = vsyncadd [#allocation9], 4294966272  ;;  %v507_v0 = vld [vmem:[#allocation5 + $0x38] sm:$0xff]  ;;  %v506_v1 = vld [vmem:[#allocation5 + $0x30] sm:$0xff]  ;;  %s384_s27 = sshll.u32 %s758_s7, 4  ;;  %s385_s27 = int_to_ptr.hbm [resolvable:$true] %s384_s27 }
  0x14   :  { %162 = vmatpush.bf16.msra.mxu0 %v507_v0  ;;  %v515_v2 = vld [vmem:[#allocation7 + $0x38] sm:$0xff]  ;;  %v514_v3 = vld [vmem:[#allocation7 + $0x30] sm:$0xff]  ;;  %v505_v4 = vld [vmem:[#allocation5 + $0x28] sm:$0xff] }
  0x15   :  { %259 = vmatpush.bf16.msra.mxu1 %v515_v2  ;;  %v513_v5 = vld [vmem:[#allocation7 + $0x28] sm:$0xff]  ;;  %v504_v6 = vld [vmem:[#allocation5 + $0x20] sm:$0xff]  ;;  %v503_v7 = vld [vmem:[#allocation5 + $0x18] sm:$0xff] }
  0x16   :  { %v502_v8 = vld [vmem:[#allocation5 + $0x10] sm:$0xff]  ;;  %v501_v9 = vld [vmem:[#allocation5 + $0x8] sm:$0xff]  ;;  %v500_v10 = vld [vmem:[#allocation5] sm:$0xff] }
  0x17   :  { %v499_v11 = vld [vmem:[#allocation2] sm:$0xff]  ;;  %v512_v12 = vld [vmem:[#allocation7 + $0x20] sm:$0xff]  ;;  %v510_v14 = vld [vmem:[#allocation7 + $0x10] sm:$0xff] }
  0x18   :  { %163 = vmatpush.bf16.msra.mxu0 %v506_v1  ;;  %v511_v13 = vld [vmem:[#allocation7 + $0x18] sm:$0xff]  ;;  %v509_v15 = vld [vmem:[#allocation7 + $0x8] sm:$0xff]  ;;  %v508_v16 = vld [vmem:[#allocation7] sm:$0xff] }
  0x19   :  { %260 = vmatpush.bf16.msra.mxu1 %v514_v3  ;;  %v523_v17 = vld [vmem:[#allocation8 + $0x38] sm:$0xff]  ;;  %v522_v18 = vld [vmem:[#allocation8 + $0x30] sm:$0xff]  ;;  %v521_v19 = vld [vmem:[#allocation8 + $0x28] sm:$0xff] }
  0x1a   :  { %360 = vmatpush.bf16.msra.mxu2 %v523_v17  ;;  %v178_v20 = vld [vmem:[%s753_s2] sm:$0x1]  ;;  %v520_v35 = vld [vmem:[#allocation8 + $0x20] sm:$0xff]  ;;  %v518_v37 = vld [vmem:[#allocation8 + $0x10] sm:$0xff] }
  0x1b   :  { %v180_v21 = vpack.i.b16 %v178_v20, %v178_v20  ;;  %v519_v36 = vld [vmem:[#allocation8 + $0x18] sm:$0xff]  ;;  %v517_v38 = vld [vmem:[#allocation8 + $0x8] sm:$0xff]  ;;  %v516_v39 = vld [vmem:[#allocation8] sm:$0xff] }
  0x1c   :  { %164 = vmatpush.bf16.msra.mxu0 %v505_v4  ;;  %v275_v40 = vld [vmem:[%s755_s4] sm:$0x1]  ;;  %s671_s4 = smov [#allocation10]  }
  0x1d   :  { %261 = vmatpush.bf16.msra.mxu1 %v513_v5  ;;  %v182_v24 = vperm.slane %v180_v21, 0  ;;  %v277_v41 = vpack.i.b16 %v275_v40, %v275_v40  ;;  %v536_v56 = vld [vmem:[%s757_s6] ss:$0 sm:$0xff]  ;;  %s382_s24 = sshll.u32 %s671_s4, 4  ;;  %s383_s24 = int_to_ptr.vmem [resolvable:$true] %s382_s24 }
  0x1e   :  { %361 = vmatpush.bf16.msra.mxu2 %v522_v18 }
  0x1f   :  { %v185_v26 = vunpack.c.l.bf16 %v182_v24  ;;  %v279_v44 = vperm.slane %v277_v41, 0 }
  0x20   :  { %165 = vmatpush.bf16.msra.mxu0 %v504_v6 }
  0x21   :  { %262 = vmatpush.bf16.msra.mxu1 %v512_v12  ;;  %v282_v46 = vunpack.c.l.bf16 %v279_v44 }
  0x22   :  { %362 = vmatpush.bf16.msra.mxu2 %v521_v19 }
  0x24   :  { %166 = vmatpush.bf16.msra.mxu0 %v503_v7 }
  0x25   :  { %263 = vmatpush.bf16.msra.mxu1 %v511_v13 }
  0x26   :  { %363 = vmatpush.bf16.msra.mxu2 %v520_v35 }
  0x28   :  { %167 = vmatpush.bf16.msra.mxu0 %v502_v8 }
  0x29   :  { %264 = vmatpush.bf16.msra.mxu1 %v510_v14 }
  0x2a   :  { %364 = vmatpush.bf16.msra.mxu2 %v519_v36 }
  0x2c   :  { %168 = vmatpush.bf16.msra.mxu0 %v501_v9 }
  0x2d   :  { %265 = vmatpush.bf16.msra.mxu1 %v509_v15 }
  0x2e   :  { %365 = vmatpush.bf16.msra.mxu2 %v518_v37 }
  0x30   :  { %169 = vmatpush.bf16.msra.mxu0 %v500_v10 }
  0x31   :  { %266 = vmatpush.bf16.msra.mxu1 %v508_v16 }
  0x32   :  { %366 = vmatpush.bf16.msra.mxu2 %v517_v38 }
  0x33   :  { %170 = vmatmul.bf16.vlgmr.msra.gmra.mxu0 %v499_v11 }
  0x36   :  { %367 = vmatpush.bf16.msra.mxu2 %v516_v39 }
  0xb0   :  { %v171_v22 = vpop.f32.mrf.mxu0 }
  0xb1   :  { %v176_v23 = vpack.c.bf16 %v171_v22, %v171_v22 }
  0xb3   :  { %v183_v25 = vunpack.c.l.bf16 %v176_v23 }
  0xb5   :  { %v186_v29 = vadd.f32 %v185_v26, %v183_v25 }
  0xb7   :  { %v192_v33 = vmax.f32 %v186_v29, 0.0 }
  0xb8   :  { %v173_v27 = vpop.f32.mrf.mxu0 }
  0xb9   :  { %v177_v28 = vpack.c.bf16 %v173_v27, %v173_v27 }
  0xbb   :  { %v184_v30 = vunpack.c.l.bf16 %v177_v28 }
  0xbd   :  { %v187_v31 = vadd.f32 %v185_v26, %v184_v30 }
  0xbf   :  { %v193_v32 = vmax.f32 %v187_v31, 0.0 }
  0xc1   :  { %v194_v34 = vpack.c.bf16 %v193_v32, %v192_v33 }
  0xc3   :  { %267 = vmatmul.bf16.vlgmr.msra.gmra.mxu1 %v194_v34 }
 0x140   :  { %v268_v42 = vpop.f32.mrf.mxu1 }
 0x141   :  { %v273_v43 = vpack.c.bf16 %v268_v42, %v268_v42 }
 0x143   :  { %v280_v45 = vunpack.c.l.bf16 %v273_v43 }
 0x145   :  { %v283_v49 = vadd.f32 %v282_v46, %v280_v45 }
 0x147   :  { %v289_v53 = vmax.f32 %v283_v49, 0.0 }
 0x148   :  { %v270_v47 = vpop.f32.mrf.mxu1 }
 0x149   :  { %v274_v48 = vpack.c.bf16 %v270_v47, %v270_v47 }
 0x14b   :  { %v281_v50 = vunpack.c.l.bf16 %v274_v48 }
 0x14d   :  { %v284_v51 = vadd.f32 %v282_v46, %v281_v50 }
 0x14f   :  { %v290_v52 = vmax.f32 %v284_v51, 0.0 }
 0x151   :  { %v291_v54 = vpack.c.bf16 %v290_v52, %v289_v53 }
 0x153   :  { %368 = vmatmul.bf16.vlgmr.msra.gmra.mxu2 %v291_v54 }
 0x1d6   :  { %v369_v55 = vpop.f32.mrf.mxu2 }
 0x1d7   :  { %v370_v58 = vadd.f32 %v536_v56, %v369_v55 }
 0x1de   :  { %v371_v57 = vpop.f32.mrf.mxu2 }
 0x1df   :  { %v372_v59 = vadd.f32 %v536_v56, %v371_v57 }
 0x1e1   :  { %v527_v60 = vpack.c.bf16 %v372_v59, %v370_v58 }
 0x1e3   :  { %528 = vst [vmem:[#allocation10] sm:$0xff] %v527_v60  }
 0x1e4   :  { %390 = dma.vmem_to_hbm [thread:$0]  %s383_s24, 128, %s385_s27, [#allocation4], %s666_s9, %s666_s9, %s667_s10  }
 0x1e5   :  { %663 = dma.done.wait [#allocation4], 128  }
 0x1e6   :  { %664 = vsyncadd [#allocation4], 4294967168 }
 0x1e7   :  { %395 = vsyncpa [#allocation3], 1 }
 0x1e8   :  { %396 = vsyncpa [#allocation6], 1 }
 0x1e9   :  { %397 = vsyncpa [#allocation9], 1 }
 0x1ea   :  { %398 = vsyncpa [#allocation4], 1 }

</bundles_post_ra>
